<compile_context>
chip_gen: v5e
topology: v5e:2x2
jax: 0.10.0
libtpu: 0.0.40
codegen_flags: <defaults>
</compile_context>

<pallas_src>
import functools
import math

import jax
import jax.numpy as jnp
from jax import lax
from jax.experimental import pallas as pl
from jax.experimental.pallas import tpu as pltpu


# ---------------------------- helpers ----------------------------

def _fit(dim, target):
    """Use the full dim if it is small, otherwise the target tile size."""
    return dim if dim <= target else target


def _pad_axis(a, axis, mult):
    pad = (-a.shape[axis]) % mult
    if pad == 0:
        return a
    widths = [(0, 0)] * a.ndim
    widths[axis] = (0, pad)
    return jnp.pad(a, widths)


def _pick_tn(n):
    """N tile: multiple of 256 (v6e/v7x MXU width), minimal padding waste."""
    if n <= 1536:
        return n
    if n % 1024 == 0:
        return 1024
    return 768


def _cparams(semantics, vmem_bytes):
    # per-call VMEM budget (double-buffered blocks + scratch + slack),
    # capped at 64 MiB so it is also valid on v7x's per-TC VMEM.
    vmem = int(min(max(vmem_bytes + (4 << 20), 16 << 20), 64 << 20))
    return pltpu.CompilerParams(dimension_semantics=semantics,
                                vmem_limit_bytes=vmem)


# ---------------------------- dense (matmul + bias + act) ----------------------------

def _dense_kernel(x_ref, w_ref, b_ref, o_ref, *, activation):
    y = jnp.dot(x_ref[...], w_ref[...], preferred_element_type=jnp.float32)
    y = y + b_ref[...]
    if activation == "gelu":
        # TODO(synk): tanh approximation of BERT's erf-GELU (tiny numeric mismatch).
        y = 0.5 * y * (1.0 + jnp.tanh(
            0.7978845608028654 * (y + 0.044715 * y * y * y)))
    o_ref[...] = y.astype(o_ref.dtype)


def dense(x2d, w, b, activation=None, out_dtype=jnp.bfloat16, tm=512, tn=None):
    """y = act(x @ w + b), full-K per block (K<=3072 fits VMEM for BERT sizes),
    bf16 operands, f32 MXU accumulation, bf16 output."""
    M, K = x2d.shape
    _, N = w.shape
    tm = _fit(M, tm)
    tn = _pick_tn(N) if tn is None else _fit(N, tn)

    xp = _pad_axis(x2d.astype(jnp.bfloat16), 0, tm)
    wp = _pad_axis(w.astype(jnp.bfloat16), 1, tn)
    bp = _pad_axis(b.reshape(1, -1).astype(jnp.float32), 1, tn)
    Mp, Np = xp.shape[0], wp.shape[1]
    ob = jnp.dtype(out_dtype).itemsize

    blk = tm * K * 2 + K * tn * 2 + tn * 4 + tm * tn * ob
    out = pl.pallas_call(
        functools.partial(_dense_kernel, activation=activation),
        out_shape=jax.ShapeDtypeStruct((Mp, Np), out_dtype),
        grid_spec=pltpu.PrefetchScalarGridSpec(
            num_scalar_prefetch=0,
            grid=(Mp // tm, Np // tn),
            in_specs=[
                pl.BlockSpec((tm, K), lambda i, j: (i, 0)),
                pl.BlockSpec((K, tn), lambda i, j: (0, j)),
                pl.BlockSpec((1, tn), lambda i, j: (0, j)),
            ],
            out_specs=pl.BlockSpec((tm, tn), lambda i, j: (i, j)),
        ),
        compiler_params=_cparams(("parallel", "parallel"), 2 * blk),
        cost_estimate=pl.CostEstimate(
            flops=2 * Mp * Np * K,
            transcendentals=(Mp * Np if activation == "gelu" else 0),
            bytes_accessed=int(xp.size * 2 + wp.size * 2 * (Mp // tm)
                               + bp.size * 4 + Mp * Np * ob)),
    )(xp, wp, bp)
    return out[:M, :N]


# ---------------------------- layernorm (+ fused residual add) ----------------------------

def _ln_core(x, g, b):
    mu = jnp.mean(x, axis=-1, keepdims=True)
    var = jnp.mean(jnp.square(x - mu), axis=-1, keepdims=True)
    return (x - mu) * lax.rsqrt(var + 1e-12) * g + b


def _ln_kernel(x_ref, g_ref, b_ref, o_ref):
    o_ref[...] = _ln_core(x_ref[...].astype(jnp.float32),
                          g_ref[...], b_ref[...]).astype(o_ref.dtype)


def _add_ln_kernel(x_ref, r_ref, g_ref, b_ref, o_ref):
    x = x_ref[...].astype(jnp.float32) + r_ref[...].astype(jnp.float32)
    o_ref[...] = _ln_core(x, g_ref[...], b_ref[...]).astype(o_ref.dtype)


def layernorm(x2d, g, b, residual=None, out_dtype=jnp.bfloat16, tm=1024):
    M, H = x2d.shape
    tm = _fit(M, tm)
    xp = _pad_axis(x2d, 0, tm)
    Mp = xp.shape[0]
    row_spec = pl.BlockSpec((tm, H), lambda i: (i, 0))
    vec_spec = pl.BlockSpec((1, H), lambda i: (0, 0))
    g2 = g.reshape(1, -1).astype(jnp.float32)
    b2 = b.reshape(1, -1).astype(jnp.float32)

    nbytes = tm * H * (jnp.dtype(xp.dtype).itemsize
                       + (2 if residual is not None else 0)
                       + jnp.dtype(out_dtype).itemsize) + 2 * H * 4
    cp = _cparams(("parallel",), 2 * nbytes)

    if residual is None:
        kern, ins, specs = _ln_kernel, (xp, g2, b2), [row_spec, vec_spec, vec_spec]
    else:
        rp = _pad_axis(residual, 0, tm)
        kern, ins = _add_ln_kernel, (xp, rp, g2, b2)
        specs = [row_spec, row_spec, vec_spec, vec_spec]

    out = pl.pallas_call(
        kern,
        out_shape=jax.ShapeDtypeStruct((Mp, H), out_dtype),
        grid_spec=pltpu.PrefetchScalarGridSpec(
            num_scalar_prefetch=0, grid=(Mp // tm,),
            in_specs=specs, out_specs=row_spec),
        compiler_params=cp,
    )(*ins)
    return out[:M]


# ---------------------------- flash attention (all heads per block) ----------------------------

def _flash_attn_kernel(q_ref, k_ref, v_ref, mask_ref, o_ref,
                       m_sc, l_sc, acc_sc, *, scale, num_heads, head_dim):
    ki = pl.program_id(2)

    @pl.when(ki == 0)
    def _():
        m_sc[...] = jnp.full_like(m_sc, -1e30)
        l_sc[...] = jnp.zeros_like(l_sc)
        acc_sc[...] = jnp.zeros_like(acc_sc)

    q = q_ref[0]                                   # (tq,  H) bf16
    k = k_ref[0]                                   # (tkv, H) bf16
    v = v_ref[0]                                   # (tkv, H) bf16
    bias = (1.0 - mask_ref[0]) * (-10000.0)        # (1, tkv) f32, 1 = keep

    for h in range(num_heads):
        sl = slice(h * head_dim, (h + 1) * head_dim)
        # 'nt' contraction: no K-tile transpose relayout in the inner loop.
        s = lax.dot_general(q[:, sl], k[:, sl], (((1,), (1,)), ((), ())),
                            preferred_element_type=jnp.float32)
        s = s * scale + bias                       # (tq, tkv) f32
        m_prev = m_sc[h]
        m_new = jnp.maximum(m_prev, jnp.max(s, axis=-1, keepdims=True))
        alpha = jnp.exp(m_prev - m_new)
        p = jnp.exp(s - m_new)
        l_sc[h] = alpha * l_sc[h] + jnp.sum(p, axis=-1, keepdims=True)
        acc_sc[h] = alpha * acc_sc[h] + jnp.dot(
            p.astype(v.dtype), v[:, sl], preferred_element_type=jnp.float32)
        m_sc[h] = m_new

    @pl.when(ki == pl.num_programs(2) - 1)
    def _():
        parts = []
        for h in range(num_heads):
            inv = pl.reciprocal(l_sc[h], approx=True)
            parts.append(acc_sc[h] * inv)
        # single lane-dense (tq, H) store instead of per-head 64-lane stores
        o_ref[0] = jnp.concatenate(parts, axis=-1).astype(o_ref.dtype)


def flash_attention(qkv, mask, num_heads, scale, t=256):
    """qkv: [B, S, 3H] fused QKV activation; mask: [B, S] (1 = keep).
    Returns [B, S, H] bf16.  All heads are processed inside one grid step, so
    there are no head split/merge transposes outside the kernel."""
    B, S, H3 = qkv.shape
    H = H3 // 3
    dh = H // num_heads
    t = _fit(S, t)

    qkvp = _pad_axis(qkv.astype(jnp.bfloat16), 1, t)
    mp = _pad_axis(mask.astype(jnp.float32), 1, t).reshape(B, 1, -1)
    Sp = qkvp.shape[1]

    if H % 128 == 0:
        # q/k/v are sliced out of the fused [B,S,3H] array via the index_map
        # (block column index 0/1/2 selects the H-wide q/k/v stripe).
        ins = (qkvp, qkvp, qkvp)
        q_spec = pl.BlockSpec((1, t, H), lambda b, qi, ki: (b, qi, 0))
        k_spec = pl.BlockSpec((1, t, H), lambda b, qi, ki: (b, ki, 1))
        v_spec = pl.BlockSpec((1, t, H), lambda b, qi, ki: (b, ki, 2))
    else:
        # fallback for H not a multiple of 128 ((8,128) lane rule)
        ins = (qkvp[..., :H], qkvp[..., H:2 * H], qkvp[..., 2 * H:])
        q_spec = pl.BlockSpec((1, t, H), lambda b, qi, ki: (b, qi, 0))
        k_spec = pl.BlockSpec((1, t, H), lambda b, qi, ki: (b, ki, 0))
        v_spec = pl.BlockSpec((1, t, H), lambda b, qi, ki: (b, ki, 0))

    blk = 4 * t * H * 2 + t * 4
    scratch = num_heads * t * (2 + dh) * 4
    out = pl.pallas_call(
        functools.partial(_flash_attn_kernel, scale=scale,
                          num_heads=num_heads, head_dim=dh),
        out_shape=jax.ShapeDtypeStruct((B, Sp, H), jnp.bfloat16),
        grid_spec=pltpu.PrefetchScalarGridSpec(
            num_scalar_prefetch=0,
            grid=(B, Sp // t, Sp // t),
            in_specs=[q_spec, k_spec, v_spec,
                      pl.BlockSpec((1, 1, t), lambda b, qi, ki: (b, 0, ki))],
            out_specs=pl.BlockSpec((1, t, H), lambda b, qi, ki: (b, qi, 0)),
            scratch_shapes=[
                pltpu.VMEM((num_heads, t, 1), jnp.float32),   # running max
                pltpu.VMEM((num_heads, t, 1), jnp.float32),   # running sum
                pltpu.VMEM((num_heads, t, dh), jnp.float32),  # out accumulator
            ],
        ),
        compiler_params=_cparams(("parallel", "parallel", "arbitrary"),
                                 2 * blk + scratch),
        cost_estimate=pl.CostEstimate(
            flops=4 * B * Sp * Sp * H,
            transcendentals=B * num_heads * Sp * Sp,
            bytes_accessed=int(qkvp.size * 2 + mp.size * 4 + B * Sp * H * 2)),
    )(*ins, mp)
    return out[:, :S, :]


# ---------------------------- softmax (inference path) ----------------------------

def _softmax_kernel(z_ref, o_ref):
    z = z_ref[...].astype(jnp.float32)
    m = jnp.max(z, axis=-1, keepdims=True)
    e = jnp.exp(z - m)
    o_ref[...] = (e / jnp.sum(e, axis=-1, keepdims=True)).astype(o_ref.dtype)


def softmax(z2d, tm=128):
    # tm kept at 128 so (tm, V) bf16-in / f32-out double-buffered blocks stay
    # well inside v7x's 64 MiB VMEM even for V ~ 21k.
    M, V = z2d.shape
    tm = _fit(M, tm)
    zp = _pad_axis(z2d, 0, tm)
    Mp = zp.shape[0]
    blk = tm * V * (jnp.dtype(zp.dtype).itemsize + 4)
    out = pl.pallas_call(
        _softmax_kernel,
        out_shape=jax.ShapeDtypeStruct((Mp, V), jnp.float32),
        grid_spec=pltpu.PrefetchScalarGridSpec(
            num_scalar_prefetch=0, grid=(Mp // tm,),
            in_specs=[pl.BlockSpec((tm, V), lambda i: (i, 0))],
            out_specs=pl.BlockSpec((tm, V), lambda i: (i, 0))),
        compiler_params=_cparams(("parallel",), 2 * blk),
        cost_estimate=pl.CostEstimate(
            flops=4 * Mp * V, transcendentals=Mp * V,
            bytes_accessed=int(zp.size * jnp.dtype(zp.dtype).itemsize
                               + Mp * V * 4)),
    )(zp)
    return out[:M]


# ---------------------------- fused classifier matmul + cross-entropy ----------------------------

def _dense_ce_kernel(x_ref, w_ref, b_ref, lbl_ref, o_ref,
                     m_sc, l_sc, lbl_sc, *, tm, tn, total_rows, total_cols,
                     ignore_index):
    i = pl.program_id(0)
    j = pl.program_id(1)

    @pl.when(j == 0)
    def _():
        m_sc[...] = jnp.full_like(m_sc, -1e30)
        l_sc[...] = jnp.zeros_like(l_sc)
        lbl_sc[...] = jnp.zeros_like(lbl_sc)

    z = jnp.dot(x_ref[...], w_ref[...], preferred_element_type=jnp.float32)
    z = z + b_ref[...]                                        # (tm, tn) logits
    col = j * tn + lax.broadcasted_iota(jnp.int32, z.shape, 1)
    z = jnp.where(col < total_cols, z, -1e30)                 # mask padded vocab

    m_prev = m_sc[...]
    m_new = jnp.maximum(m_prev, jnp.max(z, axis=-1, keepdims=True))
    alpha = jnp.exp(m_prev - m_new)
    l_sc[...] = alpha * l_sc[...] + jnp.sum(jnp.exp(z - m_new), axis=-1,
                                            keepdims=True)
    m_sc[...] = m_new
    lbl = lbl_ref[...]                                        # (tm, 1) int32
    lbl_sc[...] = lbl_sc[...] + jnp.sum(jnp.where(col == lbl, z, 0.0),
                                        axis=-1, keepdims=True)

    @pl.when(j == pl.num_programs(1) - 1)
    def _():
        row = i * tm + lax.broadcasted_iota(jnp.int32, (tm, 1), 0)
        valid = jnp.logical_and(row < total_rows, lbl != ignore_index)
        valid_f = valid.astype(jnp.float32)
        lse = m_sc[...] + jnp.log(l_sc[...])
        per_row = (lse - lbl_sc[...]) * valid_f
        o_ref[...] = jnp.concatenate(
            [jnp.sum(per_row, axis=0, keepdims=True),
             jnp.sum(valid_f, axis=0, keepdims=True)], axis=1)


def dense_ce_loss(x2d, w, b, labels_flat, *, ignore_index=-100, tm=256, tn=None):
    """mean CE of softmax(x @ w + b) vs labels without ever writing the [M, V]
    logits to HBM (online logsumexp over vocab tiles, per-row-tile partials)."""
    M, K = x2d.shape
    _, V = w.shape
    tm = _fit(M, tm)
    tn = _pick_tn(V) if tn is None else _fit(V, tn)

    xp = _pad_axis(x2d.astype(jnp.bfloat16), 0, tm)
    wp = _pad_axis(w.astype(jnp.bfloat16), 1, tn)
    bp = _pad_axis(b.reshape(1, -1).astype(jnp.float32), 1, tn)
    lp = _pad_axis(labels_flat.reshape(-1, 1).astype(jnp.int32), 0, tm)
    Mp, Vp = xp.shape[0], wp.shape[1]
    n_mt = Mp // tm

    blk = tm * K * 2 + K * tn * 2 + tn * 4 + tm * 4 + 8
    out = pl.pallas_call(
        functools.partial(_dense_ce_kernel, tm=tm, tn=tn, total_rows=M,
                          total_cols=V, ignore_index=ignore_index),
        out_shape=jax.ShapeDtypeStruct((n_mt, 2), jnp.float32),
        grid_spec=pltpu.PrefetchScalarGridSpec(
            num_scalar_prefetch=0,
            grid=(n_mt, Vp // tn),
            in_specs=[
                pl.BlockSpec((tm, K), lambda i, j: (i, 0)),
                pl.BlockSpec((K, tn), lambda i, j: (0, j)),
                pl.BlockSpec((1, tn), lambda i, j: (0, j)),
                pl.BlockSpec((tm, 1), lambda i, j: (i, 0)),
            ],
            out_specs=pl.BlockSpec((1, 2), lambda i, j: (i, 0)),
            scratch_shapes=[pltpu.VMEM((tm, 1), jnp.float32)] * 3,
        ),
        compiler_params=_cparams(("parallel", "arbitrary"),
                                 2 * blk + 3 * tm * 4),
        cost_estimate=pl.CostEstimate(
            flops=2 * Mp * Vp * K,
            transcendentals=Mp * Vp,
            bytes_accessed=int(xp.size * 2 + wp.size * 2 * n_mt
                               + lp.size * 4 + n_mt * 8)),
    )(xp, wp, bp, lp)
    total = jnp.sum(out[:, 0])
    count = jnp.maximum(jnp.sum(out[:, 1]), 1.0)
    return total / count


# ---------------------------- params / model ----------------------------

def init_params(key, vocab, hidden, num_layers, num_heads, inter, max_pos):
    def nrm(k, shape, dtype=jnp.float32):
        return (0.02 * jax.random.normal(k, shape, jnp.float32)).astype(dtype)

    keys = jax.random.split(key, 4 + num_layers)
    params = dict(
        hidden=hidden,
        num_heads=num_heads,
        word_emb=nrm(keys[0], (vocab, hidden)),
        pos_emb=nrm(keys[1], (max_pos, hidden)),
        type_emb=nrm(keys[2], (2, hidden)),
        emb_ln_g=jnp.ones((hidden,), jnp.float32),
        emb_ln_b=jnp.zeros((hidden,), jnp.float32),
        cls_w=nrm(keys[3], (hidden, vocab), jnp.bfloat16),
        cls_b=jnp.zeros((vocab,), jnp.float32),
        layers=[],
    )
    for li in range(num_layers):
        lk = jax.random.split(keys[4 + li], 6)
        params['layers'].append(dict(
            # Wq/Wk/Wv fused into one (H, 3H) matmul weight (bf16 storage).
            wqkv=jnp.concatenate(
                [nrm(lk[0], (hidden, hidden), jnp.bfloat16),
                 nrm(lk[1], (hidden, hidden), jnp.bfloat16),
                 nrm(lk[2], (hidden, hidden), jnp.bfloat16)], axis=1),
            bqkv=jnp.zeros((3 * hidden,), jnp.float32),
            wo=nrm(lk[3], (hidden, hidden), jnp.bfloat16),
            bo=jnp.zeros((hidden,), jnp.float32),
            ln1_g=jnp.ones((hidden,), jnp.float32),
            ln1_b=jnp.zeros((hidden,), jnp.float32),
            w1=nrm(lk[4], (hidden, inter), jnp.bfloat16),
            b1=jnp.zeros((inter,), jnp.float32),
            w2=nrm(lk[5], (inter, hidden), jnp.bfloat16),
            b2=jnp.zeros((hidden,), jnp.float32),
            ln2_g=jnp.ones((hidden,), jnp.float32),
            ln2_b=jnp.zeros((hidden,), jnp.float32),
        ))
    return params


def language_model_forward(params, x, attention_mask=None, labels=None):
    B, S = x.shape
    H = params['hidden']
    nH = params['num_heads']
    dh = H // nH
    M = B * S

    if attention_mask is None:
        attention_mask = jnp.ones((B, S), jnp.float32)
    else:
        attention_mask = attention_mask.astype(jnp.float32)

    # embeddings (gathers stay in XLA glue), then LayerNorm in Pallas
    h = (jnp.take(params['word_emb'], x, axis=0)
         + params['pos_emb'][None, :S, :]
         + params['type_emb'][0][None, None, :])
    h2 = layernorm(h.reshape(M, H), params['emb_ln_g'], params['emb_ln_b'])

    scale = 1.0 / math.sqrt(dh)
    for layer in params['layers']:
        qkv = dense(h2, layer['wqkv'], layer['bqkv'])             # [M, 3H] bf16
        ctx = flash_attention(qkv.reshape(B, S, 3 * H),
                              attention_mask, nH, scale)          # [B, S, H] bf16
        attn_out = dense(ctx.reshape(M, H), layer['wo'], layer['bo'])
        h2 = layernorm(h2, layer['ln1_g'], layer['ln1_b'], residual=attn_out)
        ffn = dense(dense(h2, layer['w1'], layer['b1'], activation="gelu"),
                    layer['w2'], layer['b2'])
        h2 = layernorm(h2, layer['ln2_g'], layer['ln2_b'], residual=ffn)

    if labels is not None:
        # classifier matmul fused with CE: [M, V] logits never hit HBM.
        return dense_ce_loss(h2, params['cls_w'], params['cls_b'],
                             labels.reshape(-1))
    logits = dense(h2, params['cls_w'], params['cls_b'])          # [M, V] bf16
    return softmax(logits).reshape(B, S, -1)                      # [B, S, V] f32


# ---------------------------- demo ----------------------------

if __name__ == "__main__":
    VOCAB, HIDDEN, LAYERS, HEADS, INTER, MAXPOS = 50, 128, 2, 4, 256, 32
    B, S = 2, 16

    key = jax.random.PRNGKey(0)
    kp, kx, kl = jax.random.split(key, 3)
    params = init_params(kp, VOCAB, HIDDEN, LAYERS, HEADS, INTER, MAXPOS)

    x = jax.random.randint(kx, (B, S), 0, VOCAB, dtype=jnp.int32)
    mask = jnp.ones((B, S), jnp.int32)
    labels = jax.random.randint(kl, (B, S), 0, VOCAB, dtype=jnp.int32)
    labels = labels.at[0, 0].set(-100)   # exercise ignore_index handling

    probs = language_model_forward(params, x, attention_mask=mask)
    loss = language_model_forward(params, x, attention_mask=mask, labels=labels)
    jax.block_until_ready((probs, loss))

    assert probs.shape == (B, S, VOCAB)
    assert bool(jnp.all(jnp.isfinite(probs)))
    assert bool(jnp.allclose(jnp.sum(probs, axis=-1), 1.0, atol=1e-4))
    assert bool(jnp.isfinite(loss))
    print("KERNEL_OK")
</pallas_src>

<mosaic_0001>
module attributes {stable_mosaic.version = 11 : i64} {
  func.func @_ln_kernel(%arg0: i32, %arg1: memref<32x128xf32, #tpu.memory_space<vmem>>, %arg2: memref<1x128xf32, #tpu.memory_space<vmem>>, %arg3: memref<1x128xf32, #tpu.memory_space<vmem>>, %arg4: memref<32x128xbf16, #tpu.memory_space<vmem>>) attributes {dimension_semantics = [#tpu.dimension_semantics<parallel>], iteration_bounds = array<i64: 1>, scalar_prefetch = 0 : i64, scratch_operands = 0 : i64, tpu.core_type = #tpu.core_type<tc>, window_params = [{transform_indices = @transform_0, window_bounds = array<i64: 32, 128>}, {pipeline_mode = #tpu.pipeline_mode<synchronous>, transform_indices = @transform_1, window_bounds = array<i64: 1, 128>}, {pipeline_mode = #tpu.pipeline_mode<synchronous>, transform_indices = @transform_2, window_bounds = array<i64: 1, 128>}, {transform_indices = @transform_3, window_bounds = array<i64: 32, 128>}]} {
    %c0 = arith.constant 0 : index
    %c0_0 = arith.constant 0 : index
    %0 = vector.load %arg1[%c0, %c0_0] : memref<32x128xf32, #tpu.memory_space<vmem>>, vector<32x128xf32>
    %c0_1 = arith.constant 0 : index
    %c0_2 = arith.constant 0 : index
    %1 = vector.load %arg2[%c0_1, %c0_2] : memref<1x128xf32, #tpu.memory_space<vmem>>, vector<1x128xf32>
    %c0_3 = arith.constant 0 : index
    %c0_4 = arith.constant 0 : index
    %2 = vector.load %arg3[%c0_3, %c0_4] : memref<1x128xf32, #tpu.memory_space<vmem>>, vector<1x128xf32>
    %cst = arith.constant dense<0.000000e+00> : vector<32xf32>
    %3 = vector.multi_reduction <add>, %0, %cst [1] : vector<32x128xf32> to vector<32xf32>
    %4 = vector.shape_cast %3 : vector<32xf32> to vector<32x1xf32>
    %cst_5 = arith.constant 1.280000e+02 : f32
    %5 = vector.broadcast %cst_5 : f32 to vector<32x1xf32>
    %6 = arith.divf %4, %5 : vector<32x1xf32>
    %7 = vector.broadcast %6 : vector<32x1xf32> to vector<32x128xf32>
    %8 = arith.subf %0, %7 : vector<32x128xf32>
    %9 = arith.mulf %8, %8 : vector<32x128xf32>
    %cst_6 = arith.constant dense<0.000000e+00> : vector<32xf32>
    %10 = vector.multi_reduction <add>, %9, %cst_6 [1] : vector<32x128xf32> to vector<32xf32>
    %11 = vector.shape_cast %10 : vector<32xf32> to vector<32x1xf32>
    %cst_7 = arith.constant 1.280000e+02 : f32
    %12 = vector.broadcast %cst_7 : f32 to vector<32x1xf32>
    %13 = arith.divf %11, %12 : vector<32x1xf32>
    %14 = vector.broadcast %6 : vector<32x1xf32> to vector<32x128xf32>
    %15 = arith.subf %0, %14 : vector<32x128xf32>
    %cst_8 = arith.constant 9.99999996E-13 : f32
    %16 = vector.broadcast %cst_8 : f32 to vector<32x1xf32>
    %17 = arith.addf %13, %16 : vector<32x1xf32>
    %18 = math.rsqrt %17 : vector<32x1xf32>
    %19 = vector.broadcast %18 : vector<32x1xf32> to vector<32x128xf32>
    %20 = arith.mulf %15, %19 : vector<32x128xf32>
    %21 = vector.broadcast %1 : vector<1x128xf32> to vector<32x128xf32>
    %22 = arith.mulf %20, %21 : vector<32x128xf32>
    %23 = vector.broadcast %2 : vector<1x128xf32> to vector<32x128xf32>
    %24 = arith.addf %22, %23 : vector<32x128xf32>
    %25 = arith.truncf %24 : vector<32x128xf32> to vector<32x128xbf16>
    %c0_9 = arith.constant 0 : index
    %c0_10 = arith.constant 0 : index
    %26 = vector.load %arg4[%c0_9, %c0_10] : memref<32x128xbf16, #tpu.memory_space<vmem>>, vector<32x128xbf16>
    tpu.vector_store %arg4[%c0_9, %c0_10], %25 {strides = array<i32>} : memref<32x128xbf16, #tpu.memory_space<vmem>>, vector<32x128xbf16>,
    return
  }
  func.func @transform_0(%arg0: i32) -> (i32, i32) {
    %c0_i32 = arith.constant 0 : i32
    %c0_i32_0 = arith.constant 0 : i32
    return %arg0, %c0_i32 : i32, i32
  }
  func.func @transform_1(%arg0: i32) -> (i32, i32) {
    %c0_i32 = arith.constant 0 : i32
    %c0_i32_0 = arith.constant 0 : i32
    %c0_i32_1 = arith.constant 0 : i32
    return %c0_i32, %c0_i32_0 : i32, i32
  }
  func.func @transform_2(%arg0: i32) -> (i32, i32) {
    %c0_i32 = arith.constant 0 : i32
    %c0_i32_0 = arith.constant 0 : i32
    %c0_i32_1 = arith.constant 0 : i32
    return %c0_i32, %c0_i32_0 : i32, i32
  }
  func.func @transform_3(%arg0: i32) -> (i32, i32) {
    %c0_i32 = arith.constant 0 : i32
    %c0_i32_0 = arith.constant 0 : i32
    return %arg0, %c0_i32 : i32, i32
  }
}

</mosaic_0001>

<bundles_post_ra>
// kernel: tpu_custom_call.1
= control target key start
LH: loop header
LB: loop body
LE: loop exit
PB: predicated region body
PF: predicated region fallthrough
CT: control target
= control target key end

     0   :  { %8 = vsyncpa [#allocation3], 0  ;;  %s349_s0 = inlined_call_operand.hbm [shape: f32[32,128], index: 0, kind: input, shape index: {}]   ;;  %s350_s1 = inlined_call_operand.hbm [shape: f32[1,128], index: 1, kind: input, shape index: {}]   ;;  %s351_s2 = inlined_call_operand.vmem [shape: f32[1,128], index: 2, kind: input, shape index: {}]   ;;  %s352_s3 = inlined_call_operand.hbm [shape: bf16[32,128], index: 3, kind: output, shape index: {}]  }
   0x1   :  { %9 = vsyncpa [#allocation6], 0 }
   0x2   :  { %10 = vsyncpa [#allocation4], 0  ;;  %s15_s14 = sshll.u32 %s349_s0, 4  ;;  %s289_s15 = smov [#allocation2]   ;;  %s16_s14 = int_to_ptr.hbm [resolvable:$true] %s15_s14 }
   0x3   :  { %s17_s16 = sshll.u32 %s289_s15, 4  ;;  %s29_s19 = sshll.u32 %s350_s1, 4  ;;  %s18_s16 = int_to_ptr.vmem [resolvable:$true] %s17_s16  ;;  %s30_s19 = int_to_ptr.hbm [resolvable:$true] %s29_s19 }
   0x4   :  { %s290_s20 = smov 128   ;;  %s291_s21 = smov 8  }
   0x5   :  { %23 = dma.hbm_to_vmem [thread:$0]  %s16_s14, 512, %s18_s16, [#allocation3], %s290_s20, %s290_s20, %s291_s21  }
   0x6   :  { %s292_s22 = smov [#allocation5]  }
   0x7   :  { %s31_s23 = sshll.u32 %s292_s22, 4  ;;  %s32_s23 = int_to_ptr.vmem [resolvable:$true] %s31_s23 }
   0x8   :  { %34 = dma.hbm_to_vmem [thread:$0]  %s30_s19, 16, %s32_s23, [#allocation6]  }
   0x9   :  { %283 = dma.done.wait [#allocation3], 512  }
   0xa   :  { %284 = vsyncadd [#allocation3], 4294966784 }
   0xb   :  { %285 = dma.done.wait [#allocation6], 16  }
   0xc   :  { %286 = vsyncadd [#allocation6], 4294967280  ;;  %v47_v0 = vld [vmem:[#allocation2 + $0x10] sm:$0xff]  ;;  %v45_v1 = vld [vmem:[#allocation2] sm:$0xff]  ;;  %v293_v4 = vmov 128.0   ;;  %s294_s24 = smov [#allocation7]  }
   0xd   :  { %55 = vadd.xlane.f32.xlu1 %v47_v0  ;;  %51 = vadd.xlane.f32.xlu0 %v45_v1  ;;  %v48_v2 = vld [vmem:[#allocation2 + $0x18] sm:$0xff]  ;;  %v46_v3 = vld [vmem:[#allocation2 + $0x8] sm:$0xff]  ;;  %201 = vrcp.f32 %v293_v4  ;;  %v199_v62 = vld [vmem:[#allocation5] ss:$0 sm:$0xff]  ;;  %s164_s25 = sshll.u32 %s294_s24, 4  ;;  %s166_s28 = sshll.u32 %s352_s3, 4  ;;  %s165_s25 = int_to_ptr.vmem [resolvable:$true] %s164_s25  ;;  %s167_s28 = int_to_ptr.hbm [resolvable:$true] %s166_s28 }
   0xe   :  { %s296_s29 = smov 4  }
  0x13   :  { %v202_v5 = vpop.eup %201 }
  0x14   :  { %v60_v6 = vmul.f32 128.0, %v202_v5  ;;  %vm64_vm0 = vweird.f32 %v202_v5 }
  0x15   :  { %57 = vadd.xlane.f32.xlu1 %v48_v2  ;;  %53 = vadd.xlane.f32.xlu0 %v46_v3 }
  0x16   :  { %v61_v7 = vsub.f32 1.0, %v60_v6 }
  0x18   :  { %v62_v8 = vmul.f32 %v202_v5, %v61_v7 }
  0x1a   :  { %v63_v9 = vadd.f32 %v202_v5, %v62_v8 }
  0x1c   :  { %v65_v10 = vsel %vm64_vm0, %v202_v5, %v63_v9  ;;  %v200_v5 = vld [vmem:[%s351_s2] ss:$0 sm:$0xff]  ;;  %s295_s2 = smov 64  }
  0x80   :  { %v56_v11 = vpop.xlane.xlu1 %55  ;;  %v52_v12 = vpop.xlane.xlu0 %51 }
  0x81   :  { %v68_v13 = vmul.f32 %v65_v10, %v56_v11  ;;  %v66_v14 = vmul.f32 %v65_v10, %v52_v12 }
  0x83   :  { %v323_v15 = vsub.f32 %v47_v0, %v68_v13  ;;  %v325_v16 = vsub.f32 %v45_v1, %v66_v14 }
  0x85   :  { %v76_v17 = vmul.f32 %v323_v15, %v323_v15  ;;  %v74_v18 = vmul.f32 %v325_v16, %v325_v16 }
  0x87   :  { %82 = vadd.xlane.f32.xlu0 %v76_v17  ;;  %78 = vadd.xlane.f32.xlu2 %v74_v18 }
  0x88   :  { %v58_v19 = vpop.xlane.xlu1 %57  ;;  %v54_v20 = vpop.xlane.xlu0 %53 }
  0x89   :  { %v69_v21 = vmul.f32 %v65_v10, %v58_v19  ;;  %v67_v22 = vmul.f32 %v65_v10, %v54_v20 }
  0x8b   :  { %v331_v23 = vsub.f32 %v48_v2, %v69_v21  ;;  %v333_v24 = vsub.f32 %v46_v3, %v67_v22 }
  0x8d   :  { %v77_v25 = vmul.f32 %v331_v23, %v331_v23  ;;  %v75_v26 = vmul.f32 %v333_v24, %v333_v24 }
  0x8f   :  { %84 = vadd.xlane.f32.xlu1 %v77_v25  ;;  %80 = vadd.xlane.f32.xlu2 %v75_v26 }
  0xfa   :  { %v79_v27 = vpop.xlane.xlu2 %78  ;;  %v83_v28 = vpop.xlane.xlu0 %82 }
  0xfb   :  { %v86_v29 = vmul.f32 %v79_v27, %v65_v10  ;;  %v88_v30 = vmul.f32 %v83_v28, %v65_v10 }
  0xfd   :  { %v90_v31 = vadd.f32 1e-12, %v86_v29  ;;  %v92_v32 = vadd.f32 1e-12, %v88_v30 }
  0xff   :  { %203 = vrsqrt.f32 %v90_v31  ;;  %vm120_vm3 = vweird.f32 %v92_v32  ;;  %vm100_vm4 = vweird.f32 %v90_v31 }
 0x100   :  { %205 = vrsqrt.f32 %v92_v32 }
 0x102   :  { %v85_v33 = vpop.xlane.xlu1 %84  ;;  %v81_v34 = vpop.xlane.xlu2 %80 }
 0x103   :  { %v89_v35 = vmul.f32 %v85_v33, %v65_v10  ;;  %v87_v36 = vmul.f32 %v81_v34, %v65_v10 }
 0x105   :  { %v204_v37 = vpop.eup %203  ;;  %v93_v38 = vadd.f32 1e-12, %v89_v35  ;;  %v91_v39 = vadd.f32 1e-12, %v87_v36 }
 0x106   :  { %v206_v40 = vpop.eup %205  ;;  %v95_v41 = vmul.f32 %v204_v37, %v90_v31  ;;  %vm101_vm2 = vweird.f32 %v204_v37 }
 0x107   :  { %v115_v42 = vmul.f32 %v206_v40, %v92_v32  ;;  %207 = vrsqrt.f32 %v93_v38  ;;  %vm121_vm1 = vweird.f32 %v206_v40  ;;  %vm102_vm6 = vmor %vm100_vm4, %vm101_vm2  ;;  %vm130_vm9 = vweird.f32 %v93_v38 }
 0x108   :  { %v96_v43 = vmul.f32 %v204_v37, %v95_v41  ;;  %209 = vrsqrt.f32 %v91_v39  ;;  %vm122_vm5 = vmor %vm120_vm3, %vm121_vm1  ;;  %vm110_vm11 = vweird.f32 %v91_v39 }
 0x109   :  { %v116_v44 = vmul.f32 %v206_v40, %v115_v42 }
 0x10a   :  { %v97_v45 = vmul.f32 0.5, %v96_v43 }
 0x10b   :  { %v117_v46 = vmul.f32 0.5, %v116_v44 }
 0x10c   :  { %v98_v47 = vsub.f32 1.5, %v97_v45 }
 0x10d   :  { %v208_v48 = vpop.eup %207  ;;  %v118_v49 = vsub.f32 1.5, %v117_v46 }
 0x10e   :  { %v210_v50 = vpop.eup %209  ;;  %v125_v51 = vmul.f32 %v208_v48, %v93_v38  ;;  %v99_v52 = vmul.f32 %v204_v37, %v98_v47  ;;  %vm131_vm7 = vweird.f32 %v208_v48 }
 0x10f   :  { %v119_v53 = vmul.f32 %v206_v40, %v118_v49  ;;  %v105_v54 = vmul.f32 %v210_v50, %v91_v39  ;;  %vm111_vm8 = vweird.f32 %v210_v50  ;;  %vm132_vm10 = vmor %vm130_vm9, %vm131_vm7 }
 0x110   :  { %v126_v55 = vmul.f32 %v208_v48, %v125_v51  ;;  %v103_v59 = vsel %vm102_vm6, %v204_v37, %v99_v52  ;;  %vm112_vm12 = vmor %vm110_vm11, %vm111_vm8 }
 0x111   :  { %v106_v56 = vmul.f32 %v210_v50, %v105_v54  ;;  %v123_v57 = vsel %vm122_vm5, %v206_v40, %v119_v53  ;;  %v134_v1 = vmul.f32 %v103_v59, %v325_v16 }
 0x112   :  { %v127_v58 = vmul.f32 0.5, %v126_v55  ;;  %v136_v63 = vmul.f32 %v123_v57, %v323_v15 }
 0x113   :  { %v107_v60 = vmul.f32 0.5, %v106_v56  ;;  %v141_v9 = vmul.f32 %v199_v62, %v134_v1 }
 0x114   :  { %v128_v61 = vsub.f32 1.5, %v127_v58  ;;  %v143_v6 = vmul.f32 %v199_v62, %v136_v63 }
 0x115   :  { %v108_v0 = vsub.f32 1.5, %v107_v60  ;;  %v148_v15 = vadd.f32 %v200_v5, %v141_v9 }
 0x116   :  { %v129_v2 = vmul.f32 %v208_v48, %v128_v61  ;;  %v150_v13 = vadd.f32 %v200_v5, %v143_v6 }
 0x117   :  { %v109_v3 = vmul.f32 %v210_v50, %v108_v0 }
 0x118   :  { %v133_v4 = vsel %vm132_vm10, %v208_v48, %v129_v2 }
 0x119   :  { %v137_v7 = vmul.f32 %v133_v4, %v331_v23  ;;  %v113_v8 = vsel %vm112_vm12, %v210_v50, %v109_v3 }
 0x11a   :  { %v135_v10 = vmul.f32 %v113_v8, %v333_v24 }
 0x11b   :  { %v144_v11 = vmul.f32 %v199_v62, %v137_v7 }
 0x11c   :  { %v142_v12 = vmul.f32 %v199_v62, %v135_v10 }
 0x11d   :  { %v151_v14 = vadd.f32 %v200_v5, %v144_v11 }
 0x11e   :  { %v149_v16 = vadd.f32 %v200_v5, %v142_v12 }
 0x11f   :  { %v188_v17 = vpack.c.bf16 %v151_v14, %v150_v13 }
 0x120   :  { %v183_v18 = vpack.c.bf16 %v149_v16, %v148_v15 }
 0x121   :  { %190 = vst [vmem:[#allocation7 + $0x8] sm:$0xff] %v188_v17  }
 0x122   :  { %184 = vst [vmem:[#allocation7] sm:$0xff] %v183_v18  }
 0x123   :  { %172 = dma.vmem_to_hbm [thread:$0]  %s165_s25, 256, %s167_s28, [#allocation4], %s295_s2, %s295_s2, %s296_s29  }
 0x124   :  { %287 = dma.done.wait [#allocation4], 256  }
 0x125   :  { %288 = vsyncadd [#allocation4], 4294967040 }
 0x126   :  { %177 = vsyncpa [#allocation3], 1 }
 0x127   :  { %178 = vsyncpa [#allocation6], 1 }
 0x128   :  { %179 = vsyncpa [#allocation4], 1 }

</bundles_post_ra>
